<compile_context>
chip_gen: v7x
topology: tpu7x:2x2x1
jax: 0.10.0
libtpu: 0.0.40
codegen_flags: <defaults>
</compile_context>

<pallas_src>
import jax
import jax.numpy as jnp
from jax.experimental import pallas as pl
from jax.experimental.pallas import tpu as pltpu


def _round_up(n: int, m: int) -> int:
    return ((n + m - 1) // m) * m


def _qnet_kernel(x_ref, w1t_ref, b1_ref, w2t_ref, b2_ref, o_ref):
    # x_ref:  (tile_m, in)  bf16   w1t_ref: (in, hid)  bf16   b1_ref: (1, hid) f32
    # w2t_ref:(hid, out)    bf16   b2_ref:  (1, out)   f32    o_ref:  (tile_m, out) f32
    h = jnp.dot(x_ref[...], w1t_ref[...], preferred_element_type=jnp.float32)
    h = jnp.maximum(h + b1_ref[...], 0.0)
    y = jnp.dot(h.astype(jnp.bfloat16), w2t_ref[...],
                preferred_element_type=jnp.float32) + b2_ref[...]
    o_ref[...] = y.astype(o_ref.dtype)


def prepare_params(w1, b1, w2, b2):
    """One-time parameter prep (hoisted out of the per-call path)."""
    w1t = jnp.asarray(w1.T, jnp.bfloat16)                 # (in, hid)
    w2t = jnp.asarray(w2.T, jnp.bfloat16)                 # (hid, out)
    b1_2d = jnp.asarray(b1, jnp.float32).reshape(1, -1)   # (1, hid)
    b2_2d = jnp.asarray(b2, jnp.float32).reshape(1, -1)   # (1, out)
    return w1t, b1_2d, w2t, b2_2d


def linear_qnet_forward(x, prepared, *, tile_m_max: int = 512):
    """Forward pass of Linear_QNet as a single Pallas TPU kernel.

    x:        (B, input_size) float (any float dtype; cast to bf16 for the MXU)
    prepared: output of prepare_params(w1, b1, w2, b2)
    returns:  (B, output_size) float32
    """
    w1t, b1_2d, w2t, b2_2d = prepared
    B, in_size = x.shape
    hid = w1t.shape[1]
    out_size = w2t.shape[1]

    x_bf16 = x.astype(jnp.bfloat16)

    if B <= tile_m_max:
        # Single grid step: no batch padding at all (block dims == array dims).
        n_tiles = 1
        tile_m = B
        B_pad = B
        x_p = x_bf16
    else:
        # Force an even (>=2) number of grid steps so the "parallel" batch axis
        # splits evenly across the 2 TensorCores on v7x.
        n_tiles = pl.cdiv(B, tile_m_max)
        if n_tiles % 2:
            n_tiles += 1
        tile_m = _round_up(pl.cdiv(B, n_tiles), 8)   # sublane-aligned batch tile
        B_pad = n_tiles * tile_m
        if B_pad != B:
            x_p = jnp.zeros((B_pad, in_size), jnp.bfloat16).at[:B].set(x_bf16)
        else:
            x_p = x_bf16

    out_padded = pl.pallas_call(
        _qnet_kernel,
        out_shape=jax.ShapeDtypeStruct((B_pad, out_size), jnp.float32),
        grid=(n_tiles,),
        in_specs=[
            pl.BlockSpec((tile_m, in_size), lambda i: (i, 0)),   # x tile over batch
            pl.BlockSpec((in_size, hid), lambda i: (0, 0)),      # W1^T (VMEM-resident)
            pl.BlockSpec((1, hid), lambda i: (0, 0)),            # b1
            pl.BlockSpec((hid, out_size), lambda i: (0, 0)),     # W2^T (VMEM-resident)
            pl.BlockSpec((1, out_size), lambda i: (0, 0)),       # b2
        ],
        out_specs=pl.BlockSpec((tile_m, out_size), lambda i: (i, 0)),
        compiler_params=pltpu.CompilerParams(
            dimension_semantics=("parallel",),  # shard batch tiles across TCs on v7x
        ),
    )(x_p, w1t, b1_2d, w2t, b2_2d)

    return out_padded if B_pad == B else out_padded[:B]


def init_params(key, input_size, hidden_size, output_size):
    """Deterministic PyTorch-style (uniform +-1/sqrt(fan_in)) initialization."""
    k1, k2, k3, k4 = jax.random.split(key, 4)
    bound1 = 1.0 / jnp.sqrt(input_size)
    bound2 = 1.0 / jnp.sqrt(hidden_size)
    w1 = jax.random.uniform(k1, (hidden_size, input_size), jnp.float32, -bound1, bound1)
    b1 = jax.random.uniform(k2, (hidden_size,), jnp.float32, -bound1, bound1)
    w2 = jax.random.uniform(k3, (output_size, hidden_size), jnp.float32, -bound2, bound2)
    b2 = jax.random.uniform(k4, (output_size,), jnp.float32, -bound2, bound2)
    return w1, b1, w2, b2


def _ref_forward_bf16(x, w1, b1, w2, b2):
    """Pure-JAX reference mirroring the kernel's bf16-input / f32-accumulate path."""
    xb = x.astype(jnp.bfloat16)
    h = jnp.dot(xb, w1.T.astype(jnp.bfloat16), preferred_element_type=jnp.float32) + b1
    h = jnp.maximum(h, 0.0)
    return jnp.dot(h.astype(jnp.bfloat16), w2.T.astype(jnp.bfloat16),
                   preferred_element_type=jnp.float32) + b2


if __name__ == "__main__":
    # Small shapes consistent with a Q-network: batch=2, input=16, hidden=32, actions=4
    batch, input_size, hidden_size, output_size = 2, 16, 32, 4

    key = jax.random.PRNGKey(0)
    kx, kp = jax.random.split(key)
    x = jax.random.normal(kx, (batch, input_size), jnp.float32)
    w1, b1, w2, b2 = init_params(kp, input_size, hidden_size, output_size)

    prepared = prepare_params(w1, b1, w2, b2)   # one-time weight prep (hoisted)

    out = jax.block_until_ready(linear_qnet_forward(x, prepared))
    assert out.shape == (batch, output_size)

    # bf16-matched reference (tight tolerance) and full-f32 reference (loose).
    ref_bf16 = _ref_forward_bf16(x, w1, b1, w2, b2)
    ref_f32 = jnp.maximum(x @ w1.T + b1, 0.0) @ w2.T + b2
    assert jnp.allclose(out, ref_bf16, atol=1e-4, rtol=1e-4)
    assert jnp.allclose(out, ref_f32, atol=5e-2, rtol=5e-2)

    # Larger replay-style batch to hit the multi-tile (even grid) path.
    big_b = 600
    xb = jax.random.normal(kx, (big_b, input_size), jnp.float32)
    outb = jax.block_until_ready(linear_qnet_forward(xb, prepared))
    assert outb.shape == (big_b, output_size)
    refb_bf16 = _ref_forward_bf16(xb, w1, b1, w2, b2)
    refb_f32 = jnp.maximum(xb @ w1.T + b1, 0.0) @ w2.T + b2
    assert jnp.allclose(outb, refb_bf16, atol=1e-4, rtol=1e-4)
    assert jnp.allclose(outb, refb_f32, atol=5e-2, rtol=5e-2)

    print("KERNEL_OK")
</pallas_src>

<mosaic_0001>
module attributes {stable_mosaic.version = 11 : i64} {
  func.func @_qnet_kernel(%arg0: i32, %arg1: memref<2x16xbf16, #tpu.memory_space<vmem>>, %arg2: memref<16x32xbf16, #tpu.memory_space<vmem>>, %arg3: memref<1x32xf32, #tpu.memory_space<vmem>>, %arg4: memref<32x4xbf16, #tpu.memory_space<vmem>>, %arg5: memref<1x4xf32, #tpu.memory_space<vmem>>, %arg6: memref<2x4xf32, #tpu.memory_space<vmem>>) attributes {dimension_semantics = [#tpu.dimension_semantics<parallel>], iteration_bounds = array<i64: 1>, scalar_prefetch = 0 : i64, scratch_operands = 0 : i64, tpu.core_type = #tpu.core_type<tc>, window_params = [{transform_indices = @transform_0, window_bounds = array<i64: 2, 16>}, {pipeline_mode = #tpu.pipeline_mode<synchronous>, transform_indices = @transform_1, window_bounds = array<i64: 16, 32>}, {pipeline_mode = #tpu.pipeline_mode<synchronous>, transform_indices = @transform_2, window_bounds = array<i64: 1, 32>}, {pipeline_mode = #tpu.pipeline_mode<synchronous>, transform_indices = @transform_3, window_bounds = array<i64: 32, 4>}, {pipeline_mode = #tpu.pipeline_mode<synchronous>, transform_indices = @transform_4, window_bounds = array<i64: 1, 4>}, {transform_indices = @transform_5, window_bounds = array<i64: 2, 4>}]} {
    %c0 = arith.constant 0 : index
    %c0_0 = arith.constant 0 : index
    %0 = vector.load %arg1[%c0, %c0_0] : memref<2x16xbf16, #tpu.memory_space<vmem>>, vector<2x16xbf16>
    %c0_1 = arith.constant 0 : index
    %c0_2 = arith.constant 0 : index
    %1 = vector.load %arg2[%c0_1, %c0_2] : memref<16x32xbf16, #tpu.memory_space<vmem>>, vector<16x32xbf16>
    %cst = arith.constant dense<0.000000e+00> : vector<2x32xf32>
    %2 = tpu.matmul %0, %1, %cst {dimension_numbers = #tpu.dot_dimension_numbers<[1], [0], [0], [1], [0, 0, 1, 1], [], []>} : vector<2x16xbf16>, vector<16x32xbf16>, vector<2x32xf32> -> vector<2x32xf32>
    %c0_3 = arith.constant 0 : index
    %c0_4 = arith.constant 0 : index
    %3 = vector.load %arg3[%c0_3, %c0_4] : memref<1x32xf32, #tpu.memory_space<vmem>>, vector<1x32xf32>
    %4 = vector.broadcast %3 : vector<1x32xf32> to vector<2x32xf32>
    %5 = arith.addf %2, %4 : vector<2x32xf32>
    %cst_5 = arith.constant 0.000000e+00 : f32
    %6 = vector.broadcast %cst_5 : f32 to vector<2x32xf32>
    %7 = arith.maximumf %5, %6 : vector<2x32xf32>
    %8 = arith.truncf %7 : vector<2x32xf32> to vector<2x32xbf16>
    %c0_6 = arith.constant 0 : index
    %c0_7 = arith.constant 0 : index
    %9 = vector.load %arg4[%c0_6, %c0_7] : memref<32x4xbf16, #tpu.memory_space<vmem>>, vector<32x4xbf16>
    %cst_8 = arith.constant dense<0.000000e+00> : vector<2x4xf32>
    %10 = tpu.matmul %8, %9, %cst_8 {dimension_numbers = #tpu.dot_dimension_numbers<[1], [0], [0], [1], [0, 0, 1, 1], [], []>} : vector<2x32xbf16>, vector<32x4xbf16>, vector<2x4xf32> -> vector<2x4xf32>
    %c0_9 = arith.constant 0 : index
    %c0_10 = arith.constant 0 : index
    %11 = vector.load %arg5[%c0_9, %c0_10] : memref<1x4xf32, #tpu.memory_space<vmem>>, vector<1x4xf32>
    %12 = vector.broadcast %11 : vector<1x4xf32> to vector<2x4xf32>
    %13 = arith.addf %10, %12 : vector<2x4xf32>
    %c0_11 = arith.constant 0 : index
    %c0_12 = arith.constant 0 : index
    %14 = vector.load %arg6[%c0_11, %c0_12] : memref<2x4xf32, #tpu.memory_space<vmem>>, vector<2x4xf32>
    tpu.vector_store %arg6[%c0_11, %c0_12], %13 {strides = array<i32>} : memref<2x4xf32, #tpu.memory_space<vmem>>, vector<2x4xf32>,
    return
  }
  func.func @transform_0(%arg0: i32) -> (i32, i32) {
    %c0_i32 = arith.constant 0 : i32
    %c0_i32_0 = arith.constant 0 : i32
    return %arg0, %c0_i32 : i32, i32
  }
  func.func @transform_1(%arg0: i32) -> (i32, i32) {
    %c0_i32 = arith.constant 0 : i32
    %c0_i32_0 = arith.constant 0 : i32
    %c0_i32_1 = arith.constant 0 : i32
    return %c0_i32, %c0_i32_0 : i32, i32
  }
  func.func @transform_2(%arg0: i32) -> (i32, i32) {
    %c0_i32 = arith.constant 0 : i32
    %c0_i32_0 = arith.constant 0 : i32
    %c0_i32_1 = arith.constant 0 : i32
    return %c0_i32, %c0_i32_0 : i32, i32
  }
  func.func @transform_3(%arg0: i32) -> (i32, i32) {
    %c0_i32 = arith.constant 0 : i32
    %c0_i32_0 = arith.constant 0 : i32
    %c0_i32_1 = arith.constant 0 : i32
    return %c0_i32, %c0_i32_0 : i32, i32
  }
  func.func @transform_4(%arg0: i32) -> (i32, i32) {
    %c0_i32 = arith.constant 0 : i32
    %c0_i32_0 = arith.constant 0 : i32
    %c0_i32_1 = arith.constant 0 : i32
    return %c0_i32, %c0_i32_0 : i32, i32
  }
  func.func @transform_5(%arg0: i32) -> (i32, i32) {
    %c0_i32 = arith.constant 0 : i32
    %c0_i32_0 = arith.constant 0 : i32
    return %arg0, %c0_i32 : i32, i32
  }
}

</mosaic_0001>

<bundles_post_ra>
// kernel: tpu_custom_call.1
= control target key start
LH: loop header
LB: loop body
LE: loop exit
PB: predicated region body
PF: predicated region fallthrough
CT: control target
= control target key end

     0   :  { %v223_v1 = vmov 0.0   ;;  %vm38_vm0 = vcmask 130048   ;;  %vm224_vm1 = vmmov 0   ;;  %s286_s0 = inlined_call_operand.vmem [shape: bf16[2,16], index: 0, kind: input, shape index: {}]   ;;  %s287_s1 = inlined_call_operand.vmem [shape: bf16[16,32], index: 1, kind: input, shape index: {}]   ;;  %s288_s2 = inlined_call_operand.vmem [shape: f32[1,32], index: 2, kind: input, shape index: {}]   ;;  %s289_s3 = inlined_call_operand.vmem [shape: bf16[32,4], index: 3, kind: input, shape index: {}]   ;;  %s290_s4 = inlined_call_operand.vmem [shape: f32[1,4], index: 4, kind: input, shape index: {}]   ;;  %s291_s5 = inlined_call_operand.hbm [shape: f32[2,4], index: 5, kind: output, shape index: {}]  }
   0x1   :  { %v196_v0 = vld [vmem:[%s287_s1] sm:$0xff]   ;;  %179 = vmatprep.subr.bf16.mxu0 %v223_v1  ;;  %185 = vmatprep.subr.bf16.mxu1 %v223_v1 }
   0x2   :  { %v22_v2 = vld [vmem:[%s286_s0] sm:$0x1]  ;;  %180 = vmatpush3.bf16.msra.mxu0 %v196_v0  ;;  %181 = vmatprep.mubr.msk.bf16.mxu0 %vm224_vm1, %v223_v1 }
   0x3   :  { %189 = vmatprep.mubr.msk.bf16.mxu1 %vm224_vm1, %v223_v1 }
   0x4   :  { %10 = vsyncpa [#allocation3], 0  ;;  %v197_v3 = vld [vmem:[%s289_s3] sm:$0xff]   ;;  %v198_v4 = vld [vmem:[%s289_s3 + $0x8] sm:$0xff]   ;;  %vm107_vm2 = vcmask 261120   ;;  %s225_s28 = smov [#allocation2]  }
   0x5   :  { %182 = vmatmul.mubr.msk.bf16.vlgmr.msra.gmra.mrb[0].mxu0 %vm38_vm0, %v22_v2  ;;  %186 = vmatpush3.bf16.msra.mxu1 %v197_v3  ;;  %v167_v5 = vld [vmem:[%s288_s2] ss:$0 sm:$0xff]  ;;  %s159_s3 = sshll.u32 %s225_s28, 4  ;;  %vm151_vm3 = vcmask 25600   ;;  %s160_s3 = int_to_ptr.vmem [resolvable:$true] %s159_s3 }
   0x6   :  { %187 = vmatprep.subr.bf16.mxu1 %v223_v1  ;;  %v170_v13 = vld [vmem:[%s290_s4] ss:$0 sm:$0xff]  ;;  %s199_s2 = scalar_lea.vmem %s160_s3, 32  ;;  %p204_p1 = scmp.lt.s32.totalorder %s160_s3, %s160_s3 }
   0x7   :  { %p200_p0 = scmp.ne.s32.totalorder %s160_s3, %s199_s2  ;;  %p205_p2 = scmp.lt.s32.totalorder %s199_s2, %s199_s2 }
   0x9   :  { %188 = vmatpush3.bf16.msra.mxu1 %v198_v4  ;;  %p206_p3 = por %p205_p2, %p204_p1 }
   0xb   :  { %p207_p4 = pnand %p206_p3, %p200_p0 }
  0xd8   :  { %v76_v6 = vpop.f32.mrb[0].mxu0 }
  0xd9   :  { %v77_v7 = vadd.f32 %v167_v5, %v76_v6  ;;  %v183_v8 = vpop.f32.mrb[1].mxu0 }
  0xda   :  { %v79_v9 = vpop.f32.mrb[2].mxu0 }
  0xdb   :  { %v82_v10 = vmax.f32 %v77_v7, 0.0  ;;  %v184_v11 = vpop.f32.mrb[3].mxu0 }
  0xdd   :  { %v83_v12 = vpack.c.bf16 %v82_v10, %v82_v10 }
  0xdf   :  { %190 = vmatmul.mubr.msk.bf16.vlgmr.msra.gmra.mrb[0].mxu1 %vm107_vm2, %v83_v12 }
 0x1b2   :  { %v145_v14 = vpop.f32.mrb[0].mxu1 }
 0x1b3   :  { %v146_v15 = vadd.f32 %v170_v13, %v145_v14  ;;  %v191_v16 = vpop.f32.mrb[1].mxu1 }
 0x1b4   :  { %v148_v17 = vpop.f32.mrb[2].mxu1 }
 0x1b5   :  { %v192_v18 = vpop.f32.mrb[3].mxu1  ;;  %152 = vst.msk [vmem:[#allocation2] sm:$0x3] %vm151_vm3, %v146_v15 }
 0x1b6   :  { %210 = shalt.err (!%p207_p4)
}
 0x1b7   :  { %s211_s4 = scalar_lea.hbm %s291_s5, 32 }
 0x1b8   :  { %p212_p5 = scmp.ne.s32.totalorder %s291_s5, %s211_s4  ;;  %p215_p6 = scmp.lt.u32.totalorder %s211_s4, %s291_s5 }
 0x1ba   :  { %p217_p7 = pnand %p215_p6, %p212_p5 }
 0x1bc   :  { %220 = shalt.err (!%p217_p7)
}
 0x1bd   :  { %162 = dma.vmem_to_hbm [thread:$0]  %s160_s3, 32, %s291_s5, [#allocation3]  }
 0x1be   :  { %221 = dma.done.wait [#allocation3], 32  }
 0x1bf   :  { %222 = vsyncadd [#allocation3], 4294967264 }
 0x1c0   :  { %166 = vsyncpa [#allocation3], 1 }

</bundles_post_ra>
